<compile_context>
chip_gen: v5e
topology: v5e:2x2
jax: 0.10.0
libtpu: 0.0.40
codegen_flags: <defaults>
</compile_context>

<pallas_src>
import jax
import jax.numpy as jnp
from jax.experimental import pallas as pl
from jax.experimental.pallas import tpu as pltpu

IN_CHANNELS = 16
HIDDEN = 128          # one lane width -> clean (8,128) vregs
OUT_CHANNELS = 1
BN_EPS = 1e-5


# --------------------------------------------------------------------------- #
# Kernels
# --------------------------------------------------------------------------- #
def _mm(h_bf16, w_ref):
    # bf16 operands on the MXU, f32 accumulation.
    return jnp.dot(h_bf16, w_ref[...], preferred_element_type=jnp.float32)


def _relu_bf16(a_f32):
    # bias-add + ReLU happen in f32; one (and only one) bf16 pack per layer.
    return jnp.maximum(a_f32, 0.0).astype(jnp.bfloat16)


def gcn_kernel_fused(x_ref,
                     w1_ref, b1_ref,
                     w2_ref, b2_ref,
                     w34_ref, b34_ref,
                     w4_ref, b4_ref,
                     wh_ref, bh_ref,
                     out_ref):
    """v6e/v7x variant: conv3 + residual fused into one K=2*HIDDEN matmul."""
    x = x_ref[...]                                             # bf16 from host

    h1 = _relu_bf16(_mm(x, w1_ref) + b1_ref[...])              # conv1+bn1+relu
    h2 = _relu_bf16(_mm(h1, w2_ref) + b2_ref[...])             # conv2+bn2+relu
    hcat = jnp.concatenate([h2, h1], axis=-1)                  # bf16 concat
    h3 = _relu_bf16(_mm(hcat, w34_ref) + b34_ref[...])         # conv3+res+bn3
    h4 = jnp.maximum(_mm(h3, w4_ref) + b4_ref[...], 0.0)       # conv4+bn4 (f32)

    # attention(seq-len-1) + out_proj + output Linear folded into one row:
    out_ref[...] = (jnp.sum(h4 * wh_ref[...], axis=-1, keepdims=True)
                    + bh_ref[...])


def gcn_kernel_split(x_ref,
                     w1_ref, b1_ref,
                     w2_ref, b2_ref,
                     w3_ref, wr_ref, b34_ref,
                     w4_ref, b4_ref,
                     wh_ref, bh_ref,
                     out_ref):
    """v5e variant: two K=HIDDEN matmuls, no concat (128 already fills its MXU)."""
    x = x_ref[...]

    h1 = _relu_bf16(_mm(x, w1_ref) + b1_ref[...])
    h2 = _relu_bf16(_mm(h1, w2_ref) + b2_ref[...])
    h3 = _relu_bf16(_mm(h2, w3_ref) + _mm(h1, wr_ref) + b34_ref[...])
    h4 = jnp.maximum(_mm(h3, w4_ref) + b4_ref[...], 0.0)

    out_ref[...] = (jnp.sum(h4 * wh_ref[...], axis=-1, keepdims=True)
                    + bh_ref[...])


# --------------------------------------------------------------------------- #
# Wrapper
# --------------------------------------------------------------------------- #
def _round_up(n, m):
    return (n + m - 1) // m * m


def _chip_kind():
    try:
        return jax.devices()[0].device_kind.lower()
    except Exception:
        return ""


def default_config():
    kind = _chip_kind()
    is_v5 = "v5" in kind
    is_v7 = "v7" in kind
    if is_v5 or "v6" in kind:
        vmem = 96 * 1024 * 1024        # 128 MiB physical
        tile_b = 8192
    elif is_v7:
        vmem = 48 * 1024 * 1024        # 64 MiB physical
        tile_b = 4096
    else:
        vmem = 48 * 1024 * 1024        # conservative default
        tile_b = 4096
    return dict(
        fuse_k256=not is_v5,           # K=256 fills v6e/v7x MXU; wasted on v5e
        tile_b=tile_b,
        vmem_limit_bytes=vmem,
        min_grid_steps=2 if is_v7 else 1,   # engage both v7x TensorCores
    )


def gcn_forward(x, edge_index, folded_params, *, fuse_k256=True,
                tile_b=None, vmem_limit_bytes=None, min_grid_steps=1):
    """Fused GCN forward over the node dimension."""
    # TODO(synk): edge_index unused (self-loop-only GCNConv, see header).
    del edge_index

    cfg = default_config()
    if tile_b is None:
        tile_b = cfg["tile_b"]
    if vmem_limit_bytes is None:
        vmem_limit_bytes = cfg["vmem_limit_bytes"]

    B, F_in = x.shape
    x = x.astype(jnp.bfloat16)        # halve HBM input stream; MXU sees bf16 anyway

    tb = min(tile_b, _round_up(max(B, 8), 8))
    if min_grid_steps > 1 and B > 8 * min_grid_steps:
        tb = min(tb, _round_up(pl.cdiv(B, min_grid_steps), 8))
    tb = max(tb, 8)
    grid = (pl.cdiv(B, tb),)          # ragged last block handled by Pallas

    kernel = gcn_kernel_fused if fuse_k256 else gcn_kernel_split

    in_specs = [pl.BlockSpec((tb, F_in), lambda i: (i, 0))]
    # Weights/biases: full-array blocks with constant index_map -> DMA'd once,
    # resident in VMEM across all grid steps.
    for p in folded_params:
        in_specs.append(pl.BlockSpec(p.shape, lambda i: (0, 0)))

    out = pl.pallas_call(
        kernel,
        out_shape=jax.ShapeDtypeStruct((B, OUT_CHANNELS), jnp.float32),
        grid=grid,
        in_specs=in_specs,
        out_specs=pl.BlockSpec((tb, OUT_CHANNELS), lambda i: (i, 0)),
        compiler_params=pltpu.CompilerParams(
            dimension_semantics=("parallel",),   # node axis independent
            vmem_limit_bytes=vmem_limit_bytes,
        ),
    )(x, *folded_params)
    return out


# --------------------------------------------------------------------------- #
# Parameters (synthetic, deterministic) + host-side folding
# --------------------------------------------------------------------------- #
def make_raw_params(key):
    """PyTorch-module-style params (eval mode), stored as (in, out) so layers
    compute h @ W + b."""
    keys = iter(jax.random.split(key, 40))

    def lin(n_in, n_out):
        bound = 1.0 / jnp.sqrt(jnp.float32(n_in))
        w = jax.random.uniform(next(keys), (n_in, n_out), jnp.float32, -bound, bound)
        b = jax.random.uniform(next(keys), (1, n_out), jnp.float32, -bound, bound)
        return w, b

    def bn(dim):
        gamma = jax.random.uniform(next(keys), (1, dim), jnp.float32, 0.5, 1.5)
        beta = jax.random.uniform(next(keys), (1, dim), jnp.float32, -0.5, 0.5)
        mean = jax.random.uniform(next(keys), (1, dim), jnp.float32, -0.5, 0.5)
        var = jax.random.uniform(next(keys), (1, dim), jnp.float32, 0.5, 1.5)
        return gamma, beta, mean, var

    return {
        "conv1": lin(IN_CHANNELS, HIDDEN), "bn1": bn(HIDDEN),
        "conv2": lin(HIDDEN, HIDDEN),      "bn2": bn(HIDDEN),
        "conv3": lin(HIDDEN, HIDDEN),      "bn3": bn(HIDDEN),
        "conv4": lin(HIDDEN, HIDDEN),      "bn4": bn(HIDDEN),
        "residual": lin(HIDDEN, HIDDEN),
        # q/k projections of nn.MultiheadAttention are mathematically dead for a
        # length-1 sequence (softmax of one score == 1) and are not materialized.
        "attn_v": lin(HIDDEN, HIDDEN),
        "attn_out": lin(HIDDEN, HIDDEN),
        "output": lin(HIDDEN, OUT_CHANNELS),
    }


def fold_params(raw, *, fuse_k256=True):
    """Fold BN+bias into weights, fuse conv3+residual_fc (optionally), fold
    attention + output head into one (1, HIDDEN) row, cast MXU weights to bf16."""

    def fold_bn(w, b, bn_p):
        gamma, beta, mean, var = bn_p
        scale = gamma / jnp.sqrt(var + BN_EPS)
        shift = beta - mean * scale
        return w * scale, b * scale + shift   # (in,out) * (1,out) broadcast

    w1, b1 = fold_bn(*raw["conv1"], raw["bn1"])
    w2, b2 = fold_bn(*raw["conv2"], raw["bn2"])
    w3, b3 = fold_bn(*raw["conv3"], raw["bn3"])
    w4, b4 = fold_bn(*raw["conv4"], raw["bn4"])
    wr, br = raw["residual"]
    b34 = b3 + br

    # seq-len-1 attention (softmax == 1) + out_proj + output Linear are one
    # affine map HIDDEN -> 1; fold into a single row + scalar (exact algebra).
    wv, bv = raw["attn_v"]
    wop, bop = raw["attn_out"]
    wo, bo = raw["output"]
    w_head = (wv @ wop @ wo).reshape(1, HIDDEN)          # (1, H), f32 (VPU head)
    b_head = bv @ wop @ wo + bop @ wo + bo               # (1, 1)

    bf16 = lambda a: a.astype(jnp.bfloat16)
    if fuse_k256:
        w34 = jnp.concatenate([w3, wr], axis=0)          # (2H, H)
        return (bf16(w1), b1, bf16(w2), b2, bf16(w34), b34,
                bf16(w4), b4, w_head, b_head)
    return (bf16(w1), b1, bf16(w2), b2, bf16(w3), bf16(wr), b34,
            bf16(w4), b4, w_head, b_head)


# --------------------------------------------------------------------------- #
# Pure-JAX f32 reference (faithful eval-mode module math)
# --------------------------------------------------------------------------- #
def gcn_reference(x, raw):
    def bn(h, bn_p):
        gamma, beta, mean, var = bn_p
        return (h - mean) / jnp.sqrt(var + BN_EPS) * gamma + beta

    w1, b1 = raw["conv1"]; w2, b2 = raw["conv2"]
    w3, b3 = raw["conv3"]; w4, b4 = raw["conv4"]
    wr, br = raw["residual"]
    wv, bv = raw["attn_v"]; wop, bop = raw["attn_out"]
    wo, bo = raw["output"]

    h1 = jax.nn.relu(bn(x @ w1 + b1, raw["bn1"]))
    h2 = jax.nn.relu(bn(h1 @ w2 + b2, raw["bn2"]))          # dropout: identity
    h3 = jax.nn.relu(bn(h2 @ w3 + b3, raw["bn3"]) + h1 @ wr + br)
    h4 = jax.nn.relu(bn(h3 @ w4 + b4, raw["bn4"]))
    attn = (h4 @ wv + bv) @ wop + bop                        # softmax(len-1) == 1
    return attn @ wo + bo


if __name__ == "__main__":
    key = jax.random.PRNGKey(0)
    kx, kp = jax.random.split(key)

    num_nodes = 200   # small; deliberately not a multiple of the tile size
    x = jax.random.normal(kx, (num_nodes, IN_CHANNELS), jnp.float32)
    # dummy ring graph; accepted but unused by the kernel (see TODO above)
    src = jnp.arange(num_nodes, dtype=jnp.int32)
    edge_index = jnp.stack([src, (src + 1) % num_nodes])

    cfg = default_config()
    raw = make_raw_params(kp)
    folded = fold_params(raw, fuse_k256=cfg["fuse_k256"])

    # tile_b=64 in the demo just to exercise a multi-step grid + the ragged
    # (masked) last block; production default is cfg["tile_b"].
    out = gcn_forward(x, edge_index, folded,
                      fuse_k256=cfg["fuse_k256"],
                      tile_b=64,
                      vmem_limit_bytes=cfg["vmem_limit_bytes"],
                      min_grid_steps=cfg["min_grid_steps"])
    out = jax.block_until_ready(out)

    ref = gcn_reference(x, raw)
    assert out.shape == (num_nodes, OUT_CHANNELS), out.shape
    # bf16 weights/activations vs f32 reference -> loose-ish tolerance
    max_err = float(jnp.max(jnp.abs(out - ref)))
    assert jnp.allclose(out, ref, atol=5e-2, rtol=5e-2), max_err

    print("KERNEL_OK")
</pallas_src>

<mosaic_0001>
module attributes {stable_mosaic.version = 11 : i64} {
  func.func @gcn_kernel_fused(%arg0: i32, %arg1: memref<64x16xbf16, #tpu.memory_space<vmem>>, %arg2: memref<16x128xbf16, #tpu.memory_space<vmem>>, %arg3: memref<1x128xf32, #tpu.memory_space<vmem>>, %arg4: memref<128x128xbf16, #tpu.memory_space<vmem>>, %arg5: memref<1x128xf32, #tpu.memory_space<vmem>>, %arg6: memref<256x128xbf16, #tpu.memory_space<vmem>>, %arg7: memref<1x128xf32, #tpu.memory_space<vmem>>, %arg8: memref<128x128xbf16, #tpu.memory_space<vmem>>, %arg9: memref<1x128xf32, #tpu.memory_space<vmem>>, %arg10: memref<1x128xf32, #tpu.memory_space<vmem>>, %arg11: memref<1x1xf32, #tpu.memory_space<vmem>>, %arg12: memref<64x1xf32, #tpu.memory_space<vmem>>) attributes {dimension_semantics = [#tpu.dimension_semantics<parallel>], iteration_bounds = array<i64: 4>, scalar_prefetch = 0 : i64, scratch_operands = 0 : i64, tpu.core_type = #tpu.core_type<tc>, window_params = [{transform_indices = @transform_0, window_bounds = array<i64: 64, 16>}, {pipeline_mode = #tpu.pipeline_mode<synchronous>, transform_indices = @transform_1, window_bounds = array<i64: 16, 128>}, {pipeline_mode = #tpu.pipeline_mode<synchronous>, transform_indices = @transform_2, window_bounds = array<i64: 1, 128>}, {pipeline_mode = #tpu.pipeline_mode<synchronous>, transform_indices = @transform_3, window_bounds = array<i64: 128, 128>}, {pipeline_mode = #tpu.pipeline_mode<synchronous>, transform_indices = @transform_4, window_bounds = array<i64: 1, 128>}, {pipeline_mode = #tpu.pipeline_mode<synchronous>, transform_indices = @transform_5, window_bounds = array<i64: 256, 128>}, {pipeline_mode = #tpu.pipeline_mode<synchronous>, transform_indices = @transform_6, window_bounds = array<i64: 1, 128>}, {pipeline_mode = #tpu.pipeline_mode<synchronous>, transform_indices = @transform_7, window_bounds = array<i64: 128, 128>}, {pipeline_mode = #tpu.pipeline_mode<synchronous>, transform_indices = @transform_8, window_bounds = array<i64: 1, 128>}, {pipeline_mode = #tpu.pipeline_mode<synchronous>, transform_indices = @transform_9, window_bounds = array<i64: 1, 128>}, {pipeline_mode = #tpu.pipeline_mode<synchronous>, transform_indices = @transform_10, window_bounds = array<i64: 1, 1>}, {transform_indices = @transform_11, window_bounds = array<i64: 64, 1>}]} {
    %c0 = arith.constant 0 : index
    %c0_0 = arith.constant 0 : index
    %0 = vector.load %arg1[%c0, %c0_0] : memref<64x16xbf16, #tpu.memory_space<vmem>>, vector<64x16xbf16>
    %c0_1 = arith.constant 0 : index
    %c0_2 = arith.constant 0 : index
    %1 = vector.load %arg2[%c0_1, %c0_2] : memref<16x128xbf16, #tpu.memory_space<vmem>>, vector<16x128xbf16>
    %cst = arith.constant dense<0.000000e+00> : vector<64x128xf32>
    %2 = tpu.matmul %0, %1, %cst {dimension_numbers = #tpu.dot_dimension_numbers<[1], [0], [0], [1], [0, 0, 1, 1], [], []>} : vector<64x16xbf16>, vector<16x128xbf16>, vector<64x128xf32> -> vector<64x128xf32>
    %c0_3 = arith.constant 0 : index
    %c0_4 = arith.constant 0 : index
    %3 = vector.load %arg3[%c0_3, %c0_4] : memref<1x128xf32, #tpu.memory_space<vmem>>, vector<1x128xf32>
    %4 = vector.broadcast %3 : vector<1x128xf32> to vector<64x128xf32>
    %5 = arith.addf %2, %4 : vector<64x128xf32>
    %cst_5 = arith.constant 0.000000e+00 : f32
    %6 = vector.broadcast %cst_5 : f32 to vector<64x128xf32>
    %7 = arith.maximumf %5, %6 : vector<64x128xf32>
    %8 = arith.truncf %7 : vector<64x128xf32> to vector<64x128xbf16>
    %c0_6 = arith.constant 0 : index
    %c0_7 = arith.constant 0 : index
    %9 = vector.load %arg4[%c0_6, %c0_7] : memref<128x128xbf16, #tpu.memory_space<vmem>>, vector<128x128xbf16>
    %cst_8 = arith.constant dense<0.000000e+00> : vector<64x128xf32>
    %10 = tpu.matmul %8, %9, %cst_8 {dimension_numbers = #tpu.dot_dimension_numbers<[1], [0], [0], [1], [0, 0, 1, 1], [], []>} : vector<64x128xbf16>, vector<128x128xbf16>, vector<64x128xf32> -> vector<64x128xf32>
    %c0_9 = arith.constant 0 : index
    %c0_10 = arith.constant 0 : index
    %11 = vector.load %arg5[%c0_9, %c0_10] : memref<1x128xf32, #tpu.memory_space<vmem>>, vector<1x128xf32>
    %12 = vector.broadcast %11 : vector<1x128xf32> to vector<64x128xf32>
    %13 = arith.addf %10, %12 : vector<64x128xf32>
    %cst_11 = arith.constant 0.000000e+00 : f32
    %14 = vector.broadcast %cst_11 : f32 to vector<64x128xf32>
    %15 = arith.maximumf %13, %14 : vector<64x128xf32>
    %16 = arith.truncf %15 : vector<64x128xf32> to vector<64x128xbf16>
    %17 = tpu.concatenate %16, %8 in 1 : vector<64x128xbf16>, vector<64x128xbf16> -> vector<64x256xbf16>
    %c0_12 = arith.constant 0 : index
    %c0_13 = arith.constant 0 : index
    %18 = vector.load %arg6[%c0_12, %c0_13] : memref<256x128xbf16, #tpu.memory_space<vmem>>, vector<256x128xbf16>
    %cst_14 = arith.constant dense<0.000000e+00> : vector<64x128xf32>
    %19 = tpu.matmul %17, %18, %cst_14 {dimension_numbers = #tpu.dot_dimension_numbers<[1], [0], [0], [1], [0, 0, 1, 1], [], []>} : vector<64x256xbf16>, vector<256x128xbf16>, vector<64x128xf32> -> vector<64x128xf32>
    %c0_15 = arith.constant 0 : index
    %c0_16 = arith.constant 0 : index
    %20 = vector.load %arg7[%c0_15, %c0_16] : memref<1x128xf32, #tpu.memory_space<vmem>>, vector<1x128xf32>
    %21 = vector.broadcast %20 : vector<1x128xf32> to vector<64x128xf32>
    %22 = arith.addf %19, %21 : vector<64x128xf32>
    %cst_17 = arith.constant 0.000000e+00 : f32
    %23 = vector.broadcast %cst_17 : f32 to vector<64x128xf32>
    %24 = arith.maximumf %22, %23 : vector<64x128xf32>
    %25 = arith.truncf %24 : vector<64x128xf32> to vector<64x128xbf16>
    %c0_18 = arith.constant 0 : index
    %c0_19 = arith.constant 0 : index
    %26 = vector.load %arg8[%c0_18, %c0_19] : memref<128x128xbf16, #tpu.memory_space<vmem>>, vector<128x128xbf16>
    %cst_20 = arith.constant dense<0.000000e+00> : vector<64x128xf32>
    %27 = tpu.matmul %25, %26, %cst_20 {dimension_numbers = #tpu.dot_dimension_numbers<[1], [0], [0], [1], [0, 0, 1, 1], [], []>} : vector<64x128xbf16>, vector<128x128xbf16>, vector<64x128xf32> -> vector<64x128xf32>
    %c0_21 = arith.constant 0 : index
    %c0_22 = arith.constant 0 : index
    %28 = vector.load %arg9[%c0_21, %c0_22] : memref<1x128xf32, #tpu.memory_space<vmem>>, vector<1x128xf32>
    %29 = vector.broadcast %28 : vector<1x128xf32> to vector<64x128xf32>
    %30 = arith.addf %27, %29 : vector<64x128xf32>
    %cst_23 = arith.constant 0.000000e+00 : f32
    %31 = vector.broadcast %cst_23 : f32 to vector<64x128xf32>
    %32 = arith.maximumf %30, %31 : vector<64x128xf32>
    %c0_24 = arith.constant 0 : index
    %c0_25 = arith.constant 0 : index
    %33 = vector.load %arg10[%c0_24, %c0_25] : memref<1x128xf32, #tpu.memory_space<vmem>>, vector<1x128xf32>
    %34 = vector.broadcast %33 : vector<1x128xf32> to vector<64x128xf32>
    %35 = arith.mulf %32, %34 : vector<64x128xf32>
    %cst_26 = arith.constant dense<0.000000e+00> : vector<64xf32>
    %36 = vector.multi_reduction <add>, %35, %cst_26 [1] : vector<64x128xf32> to vector<64xf32>
    %37 = vector.shape_cast %36 : vector<64xf32> to vector<64x1xf32>
    %c0_27 = arith.constant 0 : index
    %c0_28 = arith.constant 0 : index
    %38 = vector.load %arg11[%c0_27, %c0_28] : memref<1x1xf32, #tpu.memory_space<vmem>>, vector<1x1xf32>
    %39 = vector.broadcast %38 : vector<1x1xf32> to vector<64x1xf32>
    %40 = arith.addf %37, %39 : vector<64x1xf32>
    %c0_29 = arith.constant 0 : index
    %c0_30 = arith.constant 0 : index
    %41 = vector.load %arg12[%c0_29, %c0_30] : memref<64x1xf32, #tpu.memory_space<vmem>>, vector<64x1xf32>
    tpu.vector_store %arg12[%c0_29, %c0_30], %40 {strides = array<i32>} : memref<64x1xf32, #tpu.memory_space<vmem>>, vector<64x1xf32>,
    return
  }
  func.func @transform_0(%arg0: i32) -> (i32, i32) {
    %c0_i32 = arith.constant 0 : i32
    %c0_i32_0 = arith.constant 0 : i32
    return %arg0, %c0_i32 : i32, i32
  }
  func.func @transform_1(%arg0: i32) -> (i32, i32) {
    %c0_i32 = arith.constant 0 : i32
    %c0_i32_0 = arith.constant 0 : i32
    %c0_i32_1 = arith.constant 0 : i32
    return %c0_i32, %c0_i32_0 : i32, i32
  }
  func.func @transform_2(%arg0: i32) -> (i32, i32) {
    %c0_i32 = arith.constant 0 : i32
    %c0_i32_0 = arith.constant 0 : i32
    %c0_i32_1 = arith.constant 0 : i32
    return %c0_i32, %c0_i32_0 : i32, i32
  }
  func.func @transform_3(%arg0: i32) -> (i32, i32) {
    %c0_i32 = arith.constant 0 : i32
    %c0_i32_0 = arith.constant 0 : i32
    %c0_i32_1 = arith.constant 0 : i32
    return %c0_i32, %c0_i32_0 : i32, i32
  }
  func.func @transform_4(%arg0: i32) -> (i32, i32) {
    %c0_i32 = arith.constant 0 : i32
    %c0_i32_0 = arith.constant 0 : i32
    %c0_i32_1 = arith.constant 0 : i32
    return %c0_i32, %c0_i32_0 : i32, i32
  }
  func.func @transform_5(%arg0: i32) -> (i32, i32) {
    %c0_i32 = arith.constant 0 : i32
    %c0_i32_0 = arith.constant 0 : i32
    %c0_i32_1 = arith.constant 0 : i32
    return %c0_i32, %c0_i32_0 : i32, i32
  }
  func.func @transform_6(%arg0: i32) -> (i32, i32) {
    %c0_i32 = arith.constant 0 : i32
    %c0_i32_0 = arith.constant 0 : i32
    %c0_i32_1 = arith.constant 0 : i32
    return %c0_i32, %c0_i32_0 : i32, i32
  }
  func.func @transform_7(%arg0: i32) -> (i32, i32) {
    %c0_i32 = arith.constant 0 : i32
    %c0_i32_0 = arith.constant 0 : i32
    %c0_i32_1 = arith.constant 0 : i32
    return %c0_i32, %c0_i32_0 : i32, i32
  }
  func.func @transform_8(%arg0: i32) -> (i32, i32) {
    %c0_i32 = arith.constant 0 : i32
    %c0_i32_0 = arith.constant 0 : i32
    %c0_i32_1 = arith.constant 0 : i32
    return %c0_i32, %c0_i32_0 : i32, i32
  }
  func.func @transform_9(%arg0: i32) -> (i32, i32) {
    %c0_i32 = arith.constant 0 : i32
    %c0_i32_0 = arith.constant 0 : i32
    %c0_i32_1 = arith.constant 0 : i32
    return %c0_i32, %c0_i32_0 : i32, i32
  }
  func.func @transform_10(%arg0: i32) -> (i32, i32) {
    %c0_i32 = arith.constant 0 : i32
    %c0_i32_0 = arith.constant 0 : i32
    %c0_i32_1 = arith.constant 0 : i32
    return %c0_i32, %c0_i32_0 : i32, i32
  }
  func.func @transform_11(%arg0: i32) -> (i32, i32) {
    %c0_i32 = arith.constant 0 : i32
    %c0_i32_0 = arith.constant 0 : i32
    return %arg0, %c0_i32 : i32, i32
  }
}

</mosaic_0001>

<bundles_post_ra>
// kernel: tpu_custom_call.1
= control target key start
LH: loop header
LB: loop body
LE: loop exit
PB: predicated region body
PF: predicated region fallthrough
CT: control target
= control target key end

     0   :  { %s2075_s0 = inlined_call_operand.vmem [shape: bf16[200,16], index: 0, kind: input, shape index: {}]   ;;  %s2076_s1 = inlined_call_operand.vmem [shape: bf16[16,128], index: 1, kind: input, shape index: {}]   ;;  %s2077_s2 = inlined_call_operand.vmem [shape: f32[1,128], index: 2, kind: input, shape index: {}]   ;;  %s2078_s3 = inlined_call_operand.vmem [shape: bf16[128,128], index: 3, kind: input, shape index: {}]   ;;  %s2079_s4 = inlined_call_operand.vmem [shape: f32[1,128], index: 4, kind: input, shape index: {}]   ;;  %s2080_s5 = inlined_call_operand.hbm [shape: bf16[256,128], index: 5, kind: input, shape index: {}]   ;;  %s2081_s6 = inlined_call_operand.vmem [shape: f32[1,128], index: 6, kind: input, shape index: {}]   ;;  %s2082_s7 = inlined_call_operand.hbm [shape: bf16[128,128], index: 7, kind: input, shape index: {}]   ;;  %s2083_s8 = inlined_call_operand.vmem [shape: f32[1,128], index: 8, kind: input, shape index: {}]   ;;  %s2084_s9 = inlined_call_operand.vmem [shape: f32[1,128], index: 9, kind: input, shape index: {}]   ;;  %s2085_s10 = inlined_call_operand.<no memory space> [shape: f32[1,1], index: 10, kind: input, shape index: {}]   ;;  %s2086_s11 = inlined_call_operand.vmem [shape: f32[200,1], index: 11, kind: output, shape index: {}]  }
   0x1   :  { %v16_v0 = vstv %s2085_s10 }
   0x2   :  { %17 = vst [vmem:[#allocation2] sm:$0x1] %v16_v0 }
   0x3   :  { %18 = vsyncpa [#allocation4], 0 }
   0x4   :  { %19 = vsyncpa [#allocation6], 0  ;;  %s1887_s19 = smov 0   ;;  %s1889_s20 = smov 0  }
   0x5   :  { %s1891_s21 = smov 0  }
   0x6 LB: > { %s1900_s10 = sadd.s32 4294967295, %s1786_s21   ;;  %s1902_s22 = sadd.s32 1, %s1786_s21   ;;  %s1786_s21 = sphi %s1891_s21, %s2095_s21   ;;  %s1782_s20 = sphi %s1889_s20, %s2094_s20   ;;  %s1778_s19 = sphi %s1887_s19, %s2093_s19  }
   0x7   : > { %s265_s23 = ssub.s32 %s1786_s21, %s1902_s22  ;;  %s268_s24 = sadd.s32 1, %s1782_s20 }
   0x8   : > { %p266_p0 = scmp.eq.s32.totalorder %s265_s23, 0  ;;  %p278_p1 = scmp.ne.s32.totalorder %s1782_s20, %s1778_s19 }
   0x9   : > { %p279_p2 = scmp.eq.s32.totalorder %s1900_s10, 3  ;;  %p1327_p3 = scmp.ge.s32.totalorder %s1786_s21, 1 }
   0xa   : > { %s1910_s25 = scalar_select %p266_p0, %s1782_s20, %s268_s24  }
   0xb   : > { %p1912_p4 = por %p279_p2, %p278_p1  ;;  %p292_p5 = scmp.lt.s32.totalorder %s1786_s21, 5 }
   0xc   : > { %p1562_p6 = scmp.eq.s32.totalorder %s1900_s10, 0  ;;  %s315_s30 = sshll.u32 %s2080_s5, 4  ;;  %s316_s30 = int_to_ptr.hbm [resolvable:$true] %s315_s30 }
   0xd   : > { %p1917_p7 = pnand %p1327_p3, %p292_p5  ;;  %s1820_s12 = smov [#allocation3]  }
   0xe   : > { %s317_s13 = sshll.u32 %s1820_s12, 4  ;;  %s332_s16 = sshll.u32 %s2082_s7, 4  ;;  %s318_s13 = int_to_ptr.vmem [resolvable:$true] %s317_s13  ;;  %s333_s16 = int_to_ptr.hbm [resolvable:$true] %s332_s16 }
   0xf   : > { %p1555_p8 = pneg %p1917_p7  ;;  %s1821_s17 = smov 64  }
  0x10   : > { %s1822_s18 = smov 4   ;;  %s1823_s21 = smov [#allocation5]  }
  0x11   : > { %p1556_p9 = pnand %p1562_p6, %p1555_p8  ;;  %s334_s23 = sshll.u32 %s1823_s21, 4  ;;  %s335_s23 = int_to_ptr.vmem [resolvable:$true] %s334_s23 }
  0x12   : > { %376 = sbr.rel (%p1917_p7) target bundleno = 819 (0x333), region = 64 }
  0x13   : > { %1558 = dma.hbm_to_vmem [thread:$0]  (!%p1556_p9), %s316_s30, 2048, %s318_s13, [#allocation4], %s1821_s17, %s1821_s17, %s1822_s18  }
  0x14   : > { %1561 = dma.hbm_to_vmem [thread:$0]  (!%p1556_p9), %s333_s16, 1024, %s335_s23, [#allocation6], %s1821_s17, %s1821_s17, %s1822_s18  }
  0x17   : > { %1769 = dma.done.wait (%p1562_p6), [#allocation4], 2048  }
  0x18   : > { %1771 = vsyncadd (%p1562_p6), [#allocation4], 4294965248 }
  0x19   : > { %1773 = dma.done.wait (%p1562_p6), [#allocation6], 1024  }
  0x1a   : > { %1775 = vsyncadd (%p1562_p6), [#allocation6], 4294966272  ;;  %s1942_s24 = sshll.u32 %s1900_s10, 3  ;;  %v1510_v1 = vld [vmem:[%s2076_s1] sm:$0xff]  ;;  %v1518_v4 = vld [vmem:[%s2078_s3 + $0x38] sm:$0xff]  ;;  %vm485_vm0 = vcmask 130048  }
  0x1b   : > { %p430_p10 = scmp.lt.s32.totalorder %s1942_s24, 24  ;;  %505 = vmatpush.bf16.msra.mxu0 %v1510_v1  ;;  %1546 = vmatpush.bf16.msra.mxu1 %v1510_v1  ;;  %v1534_v5 = vld [vmem:[#allocation3 + $0x78] sm:$0xff]  ;;  %v1517_v6 = vld [vmem:[%s2078_s3 + $0x30] sm:$0xff]  ;;  %v1516_v8 = vld [vmem:[%s2078_s3 + $0x28] sm:$0xff]  ;;  %s422_s15 = sand.u32 1, %s1778_s19   ;;  %vm1051_vm1 = vcmask 7168  }
  0x1c   : > { %865 = vmatpush.bf16.msra.mxu3 %v1534_v5  ;;  %v1533_v7 = vld [vmem:[#allocation3 + $0x70] sm:$0xff]  ;;  %v1532_v9 = vld [vmem:[#allocation3 + $0x68] sm:$0xff]  ;;  %v1515_v10 = vld [vmem:[%s2078_s3 + $0x20] sm:$0xff]  ;;  %s1334_s16 = sshll.u32 %s422_s15, 6  ;;  %s1068_s19 = ssub.s32 (%p1912_p4), 25, %s1942_s24 }
  0x1d   : > { %s431_s27 = scalar_select %p430_p10, %s1942_s24, 24  ;;  %v1531_v13 = vld [vmem:[#allocation3 + $0x60] sm:$0xff]  ;;  %v1514_v14 = vld [vmem:[%s2078_s3 + $0x18] sm:$0xff]  ;;  %v1513_v16 = vld [vmem:[%s2078_s3 + $0x10] sm:$0xff] }
  0x1e   : > { %v1530_v15 = vld [vmem:[#allocation3 + $0x58] sm:$0xff]  ;;  %v1529_v17 = vld [vmem:[#allocation3 + $0x50] sm:$0xff]  ;;  %v1512_v18 = vld [vmem:[%s2078_s3 + $0x8] sm:$0xff]  ;;  %s1996_s17 = scalar_lea.vmem [#allocation7], %s1334_s16   ;;  %s1543_s18 = sshll.u32 (%p1912_p4), %s1900_s10, 6 }
  0x1f   : > { %s1336_s28 = sshll.u32 %s431_s27, 2  ;;  %635 = vmatpush.bf16.msrb.mxu1 %v1518_v4  ;;  %v1528_v19 = vld [vmem:[#allocation3 + $0x48] sm:$0xff]  ;;  %v1511_v20 = vld [vmem:[%s2078_s3] sm:$0xff]  ;;  %v1525_v53 = vld [vmem:[#allocation3 + $0x30] sm:$0xff]  ;;  %p1069_p11 = scmp.lt.s32.totalorder (%p1912_p4), %s1068_s19, 8 }
  0x20   : > { %s433_s12 = scalar_lea.vmem %s2075_s0, %s1336_s28  ;;  %866 = vmatpush.bf16.msra.mxu3 %v1533_v7  ;;  %v1527_v21 = vld [vmem:[#allocation3 + $0x40] sm:$0xff]  ;;  %v1658_v22 = vld [vmem:[%s2077_s2] ss:$0 sm:$0xff]  ;;  %v1524_v56 = vld [vmem:[#allocation3 + $0x28] sm:$0xff]  ;;  %s2021_s27 = scalar_lea.vmem (%p1912_p4), %s2086_s11, %s1543_s18  }
  0x21   : > { %v1506_v2 = vld [vmem:[%s433_s12] sm:$0xff]  ;;  %v1508_v3 = vld [vmem:[%s433_s12 + $0x10] sm:$0xff]  ;;  %v1507_v11 = vld [vmem:[%s433_s12 + $0x8] sm:$0xff] }
  0x22   : > { %1357 = vmatmul.msk.bf16.vlgmr.msra.gmra.mxu0 %vm485_vm0, %v1506_v2  ;;  %1359 = vmatmul.msk.bf16.vlgmr.msra.gmra.mxu1 %vm485_vm0, %v1508_v3  ;;  %v1509_v12 = vld [vmem:[%s433_s12 + $0x18] sm:$0xff] }
  0x23   : > { %636 = vmatpush.bf16.msrb.mxu1 %v1517_v6  ;;  %v1526_v49 = vld [vmem:[#allocation3 + $0x38] sm:$0xff]  ;;  %v1523_v6 = vld [vmem:[#allocation3 + $0x20] sm:$0xff] }
  0x24   : > { %867 = vmatpush.bf16.msra.mxu3 %v1532_v9  ;;  %836 = vmatpush.bf16.msra.mxu2 %v1526_v49  ;;  %v1522_v7 = vld [vmem:[#allocation3 + $0x18] sm:$0xff]  ;;  %v1520_v9 = vld [vmem:[#allocation3 + $0x8] sm:$0xff] }
  0x27   : > { %637 = vmatpush.bf16.msrb.mxu1 %v1516_v8  ;;  %v1521_v8 = vld [vmem:[#allocation3 + $0x10] sm:$0xff] }
  0x28   : > { %868 = vmatpush.bf16.msra.mxu3 %v1531_v13  ;;  %837 = vmatpush.bf16.msra.mxu2 %v1525_v53 }
  0x2b   : > { %638 = vmatpush.bf16.msrb.mxu1 %v1515_v10  ;;  %v1519_v10 = vld [vmem:[#allocation3] sm:$0xff] }
  0x2c   : > { %869 = vmatpush.bf16.msra.mxu3 %v1530_v15  ;;  %838 = vmatpush.bf16.msra.mxu2 %v1524_v56 }
  0x2f   : > { %639 = vmatpush.bf16.msrb.mxu1 %v1514_v14 }
  0x30   : > { %870 = vmatpush.bf16.msra.mxu3 %v1529_v17  ;;  %839 = vmatpush.bf16.msra.mxu2 %v1523_v6 }
  0x32   : > { %1358 = vmatmul.msk.bf16.gmra.mxu0 %vm485_vm0, %v1507_v11  ;;  %1360 = vmatmul.msk.bf16.gmra.mxu1 %vm485_vm0, %v1509_v12  ;;  %v1659_v11 = vld [vmem:[%s2079_s4] ss:$0 sm:$0xff] }
  0x33   : > { %640 = vmatpush.bf16.msrb.mxu1 %v1513_v16 }
  0x34   : > { %871 = vmatpush.bf16.msra.mxu3 %v1528_v19  ;;  %840 = vmatpush.bf16.msra.mxu2 %v1522_v7 }
  0x37   : > { %641 = vmatpush.bf16.msrb.mxu1 %v1512_v18 }
  0x38   : > { %872 = vmatpush.bf16.msra.mxu3 %v1527_v21  ;;  %841 = vmatpush.bf16.msra.mxu2 %v1521_v8 }
  0x3b   : > { %642 = vmatpush.bf16.msrb.mxu1 %v1511_v20 }
  0x3c   : > { %842 = vmatpush.bf16.msra.mxu2 %v1520_v9 }
  0x40   : > { %843 = vmatpush.bf16.msra.mxu2 %v1519_v10 }
  0x9f   : > { %v507_v23 = vpop.f32.mrf.mxu0  ;;  %v517_v34 = vpop.f32.mrf.mxu1 }
  0xa0   : > { %v508_v24 = vadd.f32 %v1658_v22, %v507_v23  ;;  %v518_v46 = vadd.f32 %v1658_v22, %v517_v34 }
  0xa2   : > { %v527_v25 = vmax.f32 %v508_v24, 0.0  ;;  %v531_v51 = vmax.f32 %v518_v46, 0.0 }
  0xa4   : > { %v535_v28 = vpack.c.bf16 %v527_v25, %v527_v25  ;;  %v539_v54 = vpack.c.bf16 %v531_v51, %v531_v51 }
  0xa6   : > { %v571_v31 = vunpack.c.l.b16 %v535_v28  ;;  %v575_v57 = vunpack.c.l.b16 %v539_v54 }
  0xa7   : > { %v509_v26 = vpop.f32.mrf.mxu0  ;;  %v519_v40 = vpop.f32.mrf.mxu1 }
  0xa8   : > { %v510_v27 = vadd.f32 %v1658_v22, %v509_v26  ;;  %v520_v47 = vadd.f32 %v1658_v22, %v519_v40 }
  0xaa   : > { %v528_v29 = vmax.f32 %v510_v27, 0.0  ;;  %v532_v52 = vmax.f32 %v520_v47, 0.0 }
  0xac   : > { %v536_v30 = vpack.c.bf16 %v528_v29, %v528_v29  ;;  %v540_v55 = vpack.c.bf16 %v532_v52, %v532_v52 }
  0xae   : > { %v572_v32 = vunpack.c.l.b16 %v536_v30  ;;  %v576_v58 = vunpack.c.l.b16 %v540_v55 }
  0xaf   : > { %v512_v33 = vpop.f32.mrf.mxu0  ;;  %v522_v50 = vpop.f32.mrf.mxu1 }
  0xb0   : > { %v579_v35 = vpack.c.b16 %v572_v32, %v571_v31  ;;  %v513_v36 = vadd.f32 %v1658_v22, %v512_v33  ;;  %v523_v60 = vadd.f32 %v1658_v22, %v522_v50  ;;  %v581_v62 = vpack.c.b16 %v576_v58, %v575_v57 }
  0xb2   : > { %643 = vmatmul.bf16.vlgmr.msrb.gmra.mxu1 %v579_v35  ;;  %873 = vmatmul.bf16.vlgmr.msra.gmra.mxu3 %v579_v35  ;;  %v529_v37 = vmax.f32 %v513_v36, 0.0  ;;  %v533_v63 = vmax.f32 %v523_v60, 0.0  ;;  %v1542_v36 = vld [vmem:[#allocation5 + $0x38] sm:$0xff] }
  0xb3   : > { %974 = vmatpush.bf16.msrb.mxu0 %v1542_v36  ;;  %v1538_v60 = vld [vmem:[#allocation5 + $0x18] sm:$0xff] }
  0xb4   : > { %v537_v41 = vpack.c.bf16 %v529_v37, %v529_v37  ;;  %v541_v1 = vpack.c.bf16 %v533_v63, %v533_v63  ;;  %v1541_v37 = vld [vmem:[#allocation5 + $0x30] sm:$0xff]  ;;  %v1535_v63 = vld [vmem:[#allocation5] sm:$0xff] }
  0xb6   : > { %v573_v44 = vunpack.c.l.b16 %v537_v41  ;;  %v577_v3 = vunpack.c.l.b16 %v541_v1  ;;  %v1540_v41 = vld [vmem:[#allocation5 + $0x28] sm:$0xff] }
  0xb7   : > { %v514_v38 = vpop.f32.mrf.mxu0  ;;  %v524_v59 = vpop.f32.mrf.mxu1  ;;  %975 = vmatpush.bf16.msrb.mxu0 %v1541_v37 }
  0xb8   : > { %v515_v39 = vadd.f32 %v1658_v22, %v514_v38  ;;  %v525_v61 = vadd.f32 %v1658_v22, %v524_v59 }
  0xba   : > { %v530_v42 = vmax.f32 %v515_v39, 0.0  ;;  %v534_v0 = vmax.f32 %v525_v61, 0.0  ;;  %v1537_v61 = vld [vmem:[#allocation5 + $0x10] sm:$0xff] }
  0xbb   : > { %976 = vmatpush.bf16.msrb.mxu0 %v1540_v41 }
  0xbc   : > { %v538_v43 = vpack.c.bf16 %v530_v42, %v530_v42  ;;  %v542_v2 = vpack.c.bf16 %v534_v0, %v534_v0 }
  0xbe   : > { %v574_v45 = vunpack.c.l.b16 %v538_v43  ;;  %v578_v4 = vunpack.c.l.b16 %v542_v2 }
  0xc0   : > { %v580_v48 = vpack.c.b16 %v574_v45, %v573_v44  ;;  %v582_v5 = vpack.c.b16 %v578_v4, %v577_v3  ;;  %v1539_v45 = vld [vmem:[#allocation5 + $0x20] sm:$0xff]  ;;  %v1660_v3 = vld [vmem:[%s2081_s6] ss:$0 sm:$0xff] }
  0xc1   : > { %977 = vmatpush.bf16.msrb.mxu0 %v1539_v45  ;;  %v1661_v45 = vld [vmem:[%s2083_s8] ss:$0 sm:$0xff] }
  0xc2   : > { %648 = vmatmul.bf16.gmra.mxu1 %v580_v48  ;;  %878 = vmatmul.bf16.gmra.mxu3 %v580_v48 }
  0xc5   : > { %978 = vmatpush.bf16.msrb.mxu0 %v1538_v60 }
  0xc9   : > { %979 = vmatpush.bf16.msrb.mxu0 %v1537_v61 }
  0xd2   : > { %653 = vmatmul.bf16.gmra.mxu1 %v581_v62  ;;  %883 = vmatmul.bf16.gmra.mxu3 %v581_v62  ;;  %v1536_v62 = vld [vmem:[#allocation5 + $0x8] sm:$0xff] }
  0xd3   : > { %980 = vmatpush.bf16.msrb.mxu0 %v1536_v62 }
  0xd7   : > { %981 = vmatpush.bf16.msrb.mxu0 %v1535_v63 }
  0xe2   : > { %658 = vmatmul.bf16.gmra.mxu1 %v582_v5  ;;  %888 = vmatmul.bf16.gmra.mxu3 %v582_v5 }
 0x12f   : > { %v644_v12 = vpop.f32.mrf.mxu1 }
 0x130   : > { %v645_v13 = vadd.f32 %v1659_v11, %v644_v12 }
 0x132   : > { %v664_v14 = vmax.f32 %v645_v13, 0.0 }
 0x134   : > { %v672_v17 = vpack.c.bf16 %v664_v14, %v664_v14 }
 0x135   : > { %v874_v0 = vpop.f32.mrf.mxu3 }
 0x136   : > { %v688_v20 = vunpack.c.l.b16 %v672_v17 }
 0x137   : > { %v646_v15 = vpop.f32.mrf.mxu1 }
 0x138   : > { %v647_v16 = vadd.f32 %v1659_v11, %v646_v15 }
 0x13a   : > { %v665_v18 = vmax.f32 %v647_v16, 0.0 }
 0x13c   : > { %v673_v19 = vpack.c.bf16 %v665_v18, %v665_v18 }
 0x13d   : > { %v876_v1 = vpop.f32.mrf.mxu3 }
 0x13e   : > { %v689_v21 = vunpack.c.l.b16 %v673_v19 }
 0x13f   : > { %v649_v22 = vpop.f32.mrf.mxu1 }
 0x140   : > { %v696_v23 = vpack.c.b16 %v689_v21, %v688_v20  ;;  %v650_v24 = vadd.f32 %v1659_v11, %v649_v22 }
 0x142   : > { %844 = vmatmul.bf16.vlgmr.msra.gmra.mxu2 %v696_v23  ;;  %v666_v25 = vmax.f32 %v650_v24, 0.0 }
 0x144   : > { %v674_v28 = vpack.c.bf16 %v666_v25, %v666_v25 }
 0x145   : > { %v879_v5 = vpop.f32.mrf.mxu3 }
 0x146   : > { %v690_v31 = vunpack.c.l.b16 %v674_v28 }
 0x147   : > { %v651_v26 = vpop.f32.mrf.mxu1 }
 0x148   : > { %v652_v27 = vadd.f32 %v1659_v11, %v651_v26 }
 0x14a   : > { %v667_v29 = vmax.f32 %v652_v27, 0.0 }
 0x14c   : > { %v675_v30 = vpack.c.bf16 %v667_v29, %v667_v29 }
 0x14d   : > { %v881_v14 = vpop.f32.mrf.mxu3 }
 0x14e   : > { %v691_v32 = vunpack.c.l.b16 %v675_v30 }
 0x14f   : > { %v654_v33 = vpop.f32.mrf.mxu1 }
 0x150   : > { %v697_v34 = vpack.c.b16 %v691_v32, %v690_v31  ;;  %v655_v35 = vadd.f32 %v1659_v11, %v654_v33 }
 0x152   : > { %849 = vmatmul.bf16.gmra.mxu2 %v697_v34  ;;  %v668_v38 = vmax.f32 %v655_v35, 0.0 }
 0x154   : > { %v676_v42 = vpack.c.bf16 %v668_v38, %v668_v38 }
 0x155   : > { %v884_v20 = vpop.f32.mrf.mxu3 }
 0x156   : > { %v692_v46 = vunpack.c.l.b16 %v676_v42 }
 0x157   : > { %v656_v39 = vpop.f32.mrf.mxu1 }
 0x158   : > { %v657_v40 = vadd.f32 %v1659_v11, %v656_v39 }
 0x15a   : > { %v669_v43 = vmax.f32 %v657_v40, 0.0 }
 0x15c   : > { %v677_v44 = vpack.c.bf16 %v669_v43, %v669_v43 }
 0x15d   : > { %v886_v26 = vpop.f32.mrf.mxu3 }
 0x15e   : > { %v693_v47 = vunpack.c.l.b16 %v677_v44 }
 0x15f   : > { %v659_v48 = vpop.f32.mrf.mxu1 }
 0x160   : > { %v698_v49 = vpack.c.b16 %v693_v47, %v692_v46  ;;  %v660_v50 = vadd.f32 %v1659_v11, %v659_v48  ;;  %v1662_v48 = vld [vmem:[%s2084_s9] ss:$0 sm:$0xff] }
 0x162   : > { %854 = vmatmul.bf16.gmra.mxu2 %v698_v49  ;;  %v670_v51 = vmax.f32 %v660_v50, 0.0 }
 0x164   : > { %v678_v54 = vpack.c.bf16 %v670_v51, %v670_v51 }
 0x165   : > { %v889_v34 = vpop.f32.mrf.mxu3 }
 0x166   : > { %v694_v57 = vunpack.c.l.b16 %v678_v54 }
 0x167   : > { %v661_v52 = vpop.f32.mrf.mxu1 }
 0x168   : > { %v662_v53 = vadd.f32 %v1659_v11, %v661_v52 }
 0x16a   : > { %v671_v55 = vmax.f32 %v662_v53, 0.0 }
 0x16c   : > { %v679_v56 = vpack.c.bf16 %v671_v55, %v671_v55 }
 0x16d   : > { %v891_v40 = vpop.f32.mrf.mxu3 }
 0x16e   : > { %v695_v58 = vunpack.c.l.b16 %v679_v56 }
 0x170   : > { %v699_v59 = vpack.c.b16 %v695_v58, %v694_v57 }
 0x172   : > { %859 = vmatmul.bf16.gmra.mxu2 %v699_v59 }
 0x1c5   : > { %v845_v2 = vpop.f32.mrf.mxu2 }
 0x1c6   : > { %v846_v4 = vadd.f32 %v1660_v3, %v845_v2 }
 0x1c8   : > { %v875_v7 = vadd.f32 %v874_v0, %v846_v4 }
 0x1ca   : > { %v894_v10 = vmax.f32 %v875_v7, 0.0 }
 0x1cd   : > { %v847_v6 = vpop.f32.mrf.mxu2 }
 0x1ce   : > { %v848_v8 = vadd.f32 %v1660_v3, %v847_v6 }
 0x1d0   : > { %v877_v9 = vadd.f32 %v876_v1, %v848_v8 }
 0x1d2   : > { %v895_v11 = vmax.f32 %v877_v9, 0.0 }
 0x1d4   : > { %v902_v12 = vpack.c.bf16 %v895_v11, %v894_v10 }
 0x1d5   : > { %v850_v13 = vpop.f32.mrf.mxu2 }
 0x1d6   : > { %982 = vmatmul.bf16.vlgmr.msrb.gmra.mxu0 %v902_v12  ;;  %v851_v15 = vadd.f32 %v1660_v3, %v850_v13 }
 0x1d8   : > { %v880_v17 = vadd.f32 %v879_v5, %v851_v15  ;;  %v1663_v15 = vld [vmem:[#allocation2] ss:$0 sm:$0xff] }
 0x1da   : > { %v896_v21 = vmax.f32 %v880_v17, 0.0 }
 0x1dd   : > { %v852_v16 = vpop.f32.mrf.mxu2 }
 0x1de   : > { %v853_v18 = vadd.f32 %v1660_v3, %v852_v16 }
 0x1e0   : > { %v882_v19 = vadd.f32 %v881_v14, %v853_v18 }
 0x1e2   : > { %v897_v22 = vmax.f32 %v882_v19, 0.0 }
 0x1e4   : > { %v903_v23 = vpack.c.bf16 %v897_v22, %v896_v21 }
 0x1e5   : > { %v855_v24 = vpop.f32.mrf.mxu2 }
 0x1e6   : > { %987 = vmatmul.bf16.gmra.mxu0 %v903_v23  ;;  %v856_v25 = vadd.f32 %v1660_v3, %v855_v24 }
 0x1e8   : > { %v885_v28 = vadd.f32 %v884_v20, %v856_v25 }
 0x1ea   : > { %v898_v31 = vmax.f32 %v885_v28, 0.0 }
 0x1ed   : > { %v857_v27 = vpop.f32.mrf.mxu2 }
 0x1ee   : > { %v858_v29 = vadd.f32 %v1660_v3, %v857_v27 }
 0x1f0   : > { %v887_v30 = vadd.f32 %v886_v26, %v858_v29 }
 0x1f2   : > { %v899_v32 = vmax.f32 %v887_v30, 0.0 }
 0x1f4   : > { %v904_v33 = vpack.c.bf16 %v899_v32, %v898_v31 }
 0x1f5   : > { %v860_v35 = vpop.f32.mrf.mxu2 }
 0x1f6   : > { %992 = vmatmul.bf16.gmra.mxu0 %v904_v33  ;;  %v861_v36 = vadd.f32 %v1660_v3, %v860_v35 }
 0x1f8   : > { %v890_v38 = vadd.f32 %v889_v34, %v861_v36 }
 0x1fa   : > { %v900_v42 = vmax.f32 %v890_v38, 0.0 }
 0x1fd   : > { %v862_v37 = vpop.f32.mrf.mxu2 }
 0x1fe   : > { %v863_v39 = vadd.f32 %v1660_v3, %v862_v37 }
 0x200   : > { %v892_v41 = vadd.f32 %v891_v40, %v863_v39 }
 0x202   : > { %v901_v43 = vmax.f32 %v892_v41, 0.0 }
 0x204   : > { %v905_v44 = vpack.c.bf16 %v901_v43, %v900_v42 }
 0x206   : > { %997 = vmatmul.bf16.gmra.mxu0 %v905_v44 }
 0x253   : > { %v983_v46 = vpop.f32.mrf.mxu0 }
 0x254   : > { %v984_v47 = vadd.f32 %v1661_v45, %v983_v46 }
 0x256   : > { %v1003_v49 = vmax.f32 %v984_v47, 0.0 }
 0x258   : > { %v1015_v50 = vmul.f32 %v1662_v48, %v1003_v49 }
 0x25a   : > { %1023 = vadd.xlane.f32.xlu0 %v1015_v50 }
 0x25b   : > { %v985_v51 = vpop.f32.mrf.mxu0 }
 0x25c   : > { %v986_v52 = vadd.f32 %v1661_v45, %v985_v51 }
 0x25e   : > { %v1004_v53 = vmax.f32 %v986_v52, 0.0 }
 0x260   : > { %v1016_v54 = vmul.f32 %v1662_v48, %v1004_v53 }
 0x262   : > { %1025 = vadd.xlane.f32.xlu0 %v1016_v54 }
 0x263   : > { %v988_v55 = vpop.f32.mrf.mxu0 }
 0x264   : > { %v989_v56 = vadd.f32 %v1661_v45, %v988_v55 }
 0x266   : > { %v1005_v57 = vmax.f32 %v989_v56, 0.0 }
 0x268   : > { %v1017_v58 = vmul.f32 %v1662_v48, %v1005_v57 }
 0x26a   : > { %1027 = vadd.xlane.f32.xlu1 %v1017_v58 }
 0x26b   : > { %v990_v59 = vpop.f32.mrf.mxu0 }
 0x26c   : > { %v991_v60 = vadd.f32 %v1661_v45, %v990_v59 }
 0x26e   : > { %v1006_v61 = vmax.f32 %v991_v60, 0.0 }
 0x270   : > { %v1018_v62 = vmul.f32 %v1662_v48, %v1006_v61 }
 0x272   : > { %1029 = vadd.xlane.f32.xlu1 %v1018_v62 }
 0x273   : > { %v993_v63 = vpop.f32.mrf.mxu0 }
 0x274   : > { %v994_v0 = vadd.f32 %v1661_v45, %v993_v63 }
 0x276   : > { %v1007_v1 = vmax.f32 %v994_v0, 0.0 }
 0x278   : > { %v1019_v2 = vmul.f32 %v1662_v48, %v1007_v1 }
 0x27a   : > { %1031 = vadd.xlane.f32.xlu2 %v1019_v2 }
 0x27b   : > { %v995_v3 = vpop.f32.mrf.mxu0 }
 0x27c   : > { %v996_v4 = vadd.f32 %v1661_v45, %v995_v3 }
 0x27e   : > { %v1008_v5 = vmax.f32 %v996_v4, 0.0 }
 0x280   : > { %v1020_v6 = vmul.f32 %v1662_v48, %v1008_v5 }
 0x282   : > { %1033 = vadd.xlane.f32.xlu2 %v1020_v6 }
 0x283   : > { %v998_v7 = vpop.f32.mrf.mxu0 }
 0x284   : > { %v999_v8 = vadd.f32 %v1661_v45, %v998_v7 }
 0x286   : > { %v1009_v9 = vmax.f32 %v999_v8, 0.0 }
 0x288   : > { %v1021_v10 = vmul.f32 %v1662_v48, %v1009_v9 }
 0x28a   : > { %1035 = vadd.xlane.f32.xlu0 %v1021_v10 }
 0x28b   : > { %v1000_v11 = vpop.f32.mrf.mxu0 }
 0x28c   : > { %v1001_v12 = vadd.f32 %v1661_v45, %v1000_v11 }
 0x28e   : > { %v1010_v13 = vmax.f32 %v1001_v12, 0.0 }
 0x290   : > { %v1022_v14 = vmul.f32 %v1662_v48, %v1010_v13 }
 0x292   : > { %1037 = vadd.xlane.f32.xlu1 %v1022_v14 }
 0x2cd   : > { %v1024_v16 = vpop.xlane.xlu0 %1023 }
 0x2ce   : > { %v1043_v17 = vadd.f32 %v1663_v15, %v1024_v16 }
 0x2d0   : > { %1052 = vst.msk [vmem:[%s1996_s17] sm:$0xff] %vm1051_vm1, %v1043_v17 }
 0x2d5   : > { %v1026_v18 = vpop.xlane.xlu0 %1025 }
 0x2d6   : > { %v1044_v19 = vadd.f32 %v1663_v15, %v1026_v18 }
 0x2d8   : > { %1053 = vst.msk [vmem:[%s1996_s17 + $0x8] sm:$0xff] %vm1051_vm1, %v1044_v19 }
 0x2dd   : > { %v1028_v20 = vpop.xlane.xlu1 %1027 }
 0x2de   : > { %v1045_v21 = vadd.f32 %v1663_v15, %v1028_v20 }
 0x2e0   : > { %1054 = vst.msk [vmem:[%s1996_s17 + $0x10] sm:$0xff] %vm1051_vm1, %v1045_v21 }
 0x2e5   : > { %v1030_v22 = vpop.xlane.xlu1 %1029 }
 0x2e6   : > { %v1046_v23 = vadd.f32 %v1663_v15, %v1030_v22 }
 0x2e8   : > { %1055 = vst.msk [vmem:[%s1996_s17 + $0x18] sm:$0xff] %vm1051_vm1, %v1046_v23 }
 0x2ed   : > { %v1032_v24 = vpop.xlane.xlu2 %1031 }
 0x2ee   : > { %v1047_v25 = vadd.f32 %v1663_v15, %v1032_v24 }
 0x2f0   : > { %1056 = vst.msk [vmem:[%s1996_s17 + $0x20] sm:$0xff] %vm1051_vm1, %v1047_v25 }
 0x2f5   : > { %v1034_v26 = vpop.xlane.xlu2 %1033 }
 0x2f6   : > { %v1048_v27 = vadd.f32 %v1663_v15, %v1034_v26 }
 0x2f8   : > { %1057 = vst.msk [vmem:[%s1996_s17 + $0x28] sm:$0xff] %vm1051_vm1, %v1048_v27 }
 0x2fd   : > { %v1036_v28 = vpop.xlane.xlu0 %1035 }
 0x2fe   : > { %v1049_v29 = vadd.f32 %v1663_v15, %v1036_v28 }
 0x300   : > { %1058 = vst.msk [vmem:[%s1996_s17 + $0x30] sm:$0xff] %vm1051_vm1, %v1049_v29 }
 0x304   : > { %1066 = sbr.rel (!%p1912_p4) target bundleno = 819 (0x333), region = 76 }
 0x305   : > { %v1038_v30 = vpop.xlane.xlu1 %1037 }
 0x306   : > { %v1050_v31 = vadd.f32 %v1663_v15, %v1038_v30 }
 0x308   : > { %1059 = vst.msk [vmem:[%s1996_s17 + $0x38] sm:$0xff] %vm1051_vm1, %v1050_v31 }
 0x309   : > { %s2097_s19 = smov (!%p1069_p11, %s1068_s19), 8 }
 0x30a   : > { %s1491_s28 = sshll.u32 %s2097_s19, 3 }
 0x30b   : > { %p1494_p12 = scmp.eq.s32.totalorder %s1491_s28, 0 }
 0x30c   : > { %s2027_s29 = sshrl.u32 (!%p1494_p12), %s2097_s19, 3 }
 0x30d   : > { %1077 = sbr.rel (%p1494_p12) target bundleno = 819 (0x333), region = 80  ;;  %p1495_p13 = scmp.le.s32.totalorder (!%p1494_p12), %s2027_s29, 0 }
 0x312   : > { %1264 = sbr.rel (%p1495_p13) target bundleno = 802 (0x322), region = 157  ;;  %s2089_s10 = smov (!%p1495_p13), %s2021_s27 }
 0x313   : > { %s2090_s26 = smov (!%p1495_p13), %s1996_s17  ;;  %s2036_s24 = smov (!%p1495_p13), 0  }
 0x314   : > { %s2038_s30 = smov (!%p1495_p13), 0  }
 0x317 LB: >> { %v1154_v32 = vld [vmem:[%s1794_s26] sm:$0xff]  ;;  %v1156_v33 = vld [vmem:[%s1794_s26 + $0x8] sm:$0xff]  ;;  %v1158_v34 = vld [vmem:[%s1794_s26 + $0x10] sm:$0xff]  ;;  %s1170_s13 = sadd.s32 1, %s1798_s24  ;;  %s1148_s30 = sadd.s32 1, %s1802_s30   ;;  %s1802_s30 = sphi %s2038_s30, %s1148_s30   ;;  %s1798_s24 = sphi %s2036_s24, %s2092_s24   ;;  %s1794_s26 = sphi %s2090_s26, %s1175_s26   ;;  %s1790_s10 = sphi %s2089_s10, %s2091_s10  }
 0x318   : >> { %1155 = vst [vmem:[%s1790_s10] sm:$0xff] %v1154_v32  ;;  %v1160_v35 = vld [vmem:[%s1794_s26 + $0x18] sm:$0xff]  ;;  %p1171_p0 = scmp.ge.s32.totalorder %s1170_s13, %s2027_s29  ;;  %v1162_v36 = vld [vmem:[%s1794_s26 + $0x20] sm:$0xff]  ;;  %v1164_v37 = vld [vmem:[%s1794_s26 + $0x28] sm:$0xff]  ;;  %p1147_p1 = scmp.ge.s32.totalorder %s1148_s30, %s2027_s29 }
 0x319   : >> { %1157 = vst [vmem:[%s1790_s10 + $0x8] sm:$0xff] %v1156_v33  ;;  %v1166_v38 = vld [vmem:[%s1794_s26 + $0x30] sm:$0xff]  ;;  %v1168_v39 = vld [vmem:[%s1794_s26 + $0x38] sm:$0xff] }
 0x31a   : >> { %1159 = vst [vmem:[%s1790_s10 + $0x10] sm:$0xff] %v1158_v34  ;;  %s2099_s13 = smov (%p1171_p0, %s1170_s13), 0 }
 0x31b   : >> { %1161 = vst [vmem:[%s1790_s10 + $0x18] sm:$0xff] %v1160_v35  ;;  %s1496_s14 = sshll.u32 %s2099_s13, 6  ;;  %s2092_s24 = smov %s2099_s13 }
 0x31c   : >> { %1163 = vst [vmem:[%s1790_s10 + $0x20] sm:$0xff] %v1162_v36  ;;  %s1175_s26 = scalar_lea.vmem %s1996_s17, %s1496_s14 [#allocation7]   ;;  %s1176_s12 = scalar_lea.vmem %s2021_s27, %s1496_s14  }
 0x31d   : >> { %1165 = vst [vmem:[%s1790_s10 + $0x28] sm:$0xff] %v1164_v37  ;;  %1150 = sbr.rel (!%p1147_p1) target bundleno = 791 (0x317), region = 163 }
 0x31e   : >> { %1167 = vst [vmem:[%s1790_s10 + $0x30] sm:$0xff] %v1166_v38 }
 0x31f   : >> { %1169 = vst [vmem:[%s1790_s10 + $0x38] sm:$0xff] %v1168_v39  ;;  %s2091_s10 = smov %s1176_s12 }
 0x322 PF: > { %s2057_s15 = sand.u32 7, %s2097_s19   ;;  %s1544_s16 = sshll.u32 %s2027_s29, 6 }
 0x323   : > { %s1181_s18 = scalar_lea.vmem %s1996_s17, %s1544_s16 [#allocation7]   ;;  %s1183_s21 = scalar_lea.vmem %s2021_s27, %s1544_s16  }
 0x324   : > { %p1501_p2 = scmp.le.s32.totalorder %s2057_s15, 0 }
 0x325   : > { %s1804_s23 = smov (!%p1501_p2), %s1183_s21   ;;  %s1808_s28 = smov (!%p1501_p2), %s1181_s18  }
 0x326   : > { %1278 = sbr.rel (%p1501_p2) target bundleno = 819 (0x333), region = 168  ;;  %s1812_s14 = smov (!%p1501_p2), 0  }
 0x327   : > { %s1816_s13 = smov (!%p1501_p2), 0  }
 0x32b LB: >> { %v1193_v40 = vld [vmem:[%s1810_s28] sm:$0xff]  ;;  %s1195_s19 = sadd.s32 1, %s1814_s14  ;;  %s1187_s13 = sadd.s32 1, %s1818_s13   ;;  %s1818_s13 = sphi %s1816_s13, %s1187_s13   ;;  %s1814_s14 = sphi %s1812_s14, %s1813_s14   ;;  %s1810_s28 = sphi %s1808_s28, %s1200_s28   ;;  %s1806_s23 = sphi %s1804_s23, %s1201_s23  }
 0x32c   : >> { %1194 = vst [vmem:[%s1806_s23] sm:$0xff] %v1193_v40  ;;  %p1196_p3 = scmp.ge.s32.totalorder %s1195_s19, %s2057_s15  ;;  %p1186_p4 = scmp.ge.s32.totalorder %s1187_s13, %s2057_s15 }
 0x32e   : >> { %s2101_s19 = smov (%p1196_p3, %s1195_s19), 0  ;;  %1189 = sbr.rel (!%p1186_p4) target bundleno = 811 (0x32b), region = 174 }
 0x32f   : >> { %s1502_s17 = sshll.u32 %s2101_s19, 3  ;;  %s1813_s14 = smov %s2101_s19  }
 0x330   : >> { %s1200_s28 = scalar_lea.vmem %s1181_s18, %s1502_s17 [#allocation7]   ;;  %s1201_s23 = scalar_lea.vmem %s1183_s21, %s1502_s17  }
 0x333 PF: > { %p22_p5 = scmp.ge.s32.totalorder %s1902_s22, 6   ;;  %s2093_s19 = smov %s1782_s20 }
 0x334   : > { %s2094_s20 = smov %s1910_s25  ;;  %s2095_s21 = smov %s1902_s22 }
 0x335   :  { %24 = sbr.rel (!%p22_p5) target bundleno = 6 (0x6), region = 185 }
 0x33a   :  { %1217 = vsyncpa [#allocation4], 1 }
 0x33b   :  { %1219 = vsyncpa [#allocation4 + $0x1], 1 }
 0x33c   :  { %1220 = vsyncpa [#allocation6], 1 }

</bundles_post_ra>
